<compile_context>
chip_gen: v7x
topology: tpu7x:2x2x1
jax: 0.10.0
libtpu: 0.0.40
codegen_flags: <defaults>
</compile_context>

<pallas_src>
import functools

import jax
import jax.numpy as jnp
from jax.experimental import pallas as pl
from jax.experimental.pallas import tpu as pltpu


def _divisors(n):
    ds = set()
    i = 1
    while i * i <= n:
        if n % i == 0:
            ds.add(i)
            ds.add(n // i)
        i += 1
    return sorted(ds)


def _pick_tile(full, limit, align):
    """Largest divisor t of `full` with (t == full or t % align == 0) and t <= limit.
    Falls back to the smallest valid divisor if none fits under `limit`."""
    valid = [t for t in _divisors(full) if t == full or t % align == 0]
    fitting = [t for t in valid if t <= limit]
    return max(fitting) if fitting else min(valid)


def _chip_budget():
    """Returns (per-input block byte target, vmem_limit_bytes), generation dependent."""
    try:
        info = pltpu.get_tpu_info()
        vmem = getattr(info, "vmem_capacity_bytes", None)
    except Exception:
        vmem = None
    if vmem is not None and vmem >= 100 * 1024 * 1024:
        # v5e / v6e: 128 MiB physical VMEM -> larger streaming blocks, deeper overlap.
        return 4 * 1024 * 1024, 64 * 1024 * 1024
    # v7x (64 MiB / TensorCore) or unknown: conservative budget.
    return 2 * 1024 * 1024, 32 * 1024 * 1024


def _masked_kernel(pred_ref, targ_ref, mrow_ref, mcol_ref, out_ref, acc_ref, *, squared):
    """Blocks: pred/targ (tb, ts, S); mrow (tb, 1, S); mcol (tb, 1, 1, ts); out (1, tb, 1)."""
    si = pl.program_id(1)

    @pl.when(si == 0)
    def _():
        acc_ref[...] = jnp.zeros_like(acc_ref)

    d = pred_ref[...].astype(jnp.float32) - targ_ref[...].astype(jnp.float32)
    a = d * d if squared else jnp.abs(d)
    # Lane-aligned row mask (factor over column index j), then the data reduction over lanes.
    r = jnp.sum(a * mrow_ref[...], axis=-1)            # (tb, ts)
    # Column factor (row index i) applied to the reduced partial, not to the full block.
    col = mcol_ref[...].reshape(r.shape)                # (tb, ts)
    acc_ref[...] += r * col

    @pl.when(si == pl.num_programs(1) - 1)
    def _():
        # Single small cross-lane collapse + one vector store per batch tile.
        out_ref[...] = jnp.sum(acc_ref[...], axis=-1, keepdims=True)[None]


def _unmasked_kernel(pred_ref, targ_ref, out_ref, acc_ref, *, squared):
    """Flattened lane-dense path.  Blocks: pred/targ (tb, c); out (1, tb, 1); acc (tb, 1)."""
    ci = pl.program_id(1)

    @pl.when(ci == 0)
    def _():
        acc_ref[...] = jnp.zeros_like(acc_ref)

    d = pred_ref[...].astype(jnp.float32) - targ_ref[...].astype(jnp.float32)
    a = d * d if squared else jnp.abs(d)
    acc_ref[...] += jnp.sum(a, axis=-1, keepdims=True)   # (tb, 1)

    @pl.when(ci == pl.num_programs(1) - 1)
    def _():
        out_ref[...] = acc_ref[...][None]


def euclidean_distance_loss(predicted_distances, target_distances, attention_mask=None,
                            *, normalize=True, squared=False, block_target_bytes=None):
    B, S, S_ = predicted_distances.shape
    assert S == S_, "distance matrices must be (B, S, S)"
    assert target_distances.shape == (B, S, S)

    itemsize = jnp.dtype(predicted_distances.dtype).itemsize
    chip_target, vmem_limit = _chip_budget()
    block_target = chip_target if block_target_bytes is None else int(block_target_bytes)

    if attention_mask is not None:
        # ---------------- masked path: (tb, ts, S) blocks, factored pair mask ----------------
        mask_f = attention_mask.astype(jnp.float32)
        # |m| (abs path) / m^2 (squared path) makes the pair-mask factorization exact for any
        # real-valued mask, not just binary ones.
        factor = mask_f * mask_f if squared else jnp.abs(mask_f)

        row_bytes = S * itemsize
        ts = _pick_tile(S, max(8, block_target // max(row_bytes, 1)), 8)
        sent_block_bytes = ts * S * itemsize
        tb_limit = max(1, block_target // max(sent_block_bytes, 1))
        if B >= 2:
            tb_limit = min(tb_limit, B // 2)   # keep >=2 "parallel" tiles (v7x has 2 TCs)
        tb = _pick_tile(B, max(1, tb_limit), 1)
        nb, ns = B // tb, S // ts

        mrow = factor.reshape(B, 1, S)          # lane (column-index) factor, full width
        mcol = factor.reshape(B, ns, 1, ts)     # per-row-tile slice, lane dense, no padding

        grid = (nb, ns)
        in_specs = [
            pl.BlockSpec((tb, ts, S), lambda bi, si: (bi, si, 0)),
            pl.BlockSpec((tb, ts, S), lambda bi, si: (bi, si, 0)),
            pl.BlockSpec((tb, 1, S), lambda bi, si: (bi, 0, 0)),
            pl.BlockSpec((tb, 1, 1, ts), lambda bi, si: (bi, si, 0, 0)),
        ]
        inputs = [predicted_distances, target_distances, mrow, mcol]
        kernel = functools.partial(_masked_kernel, squared=squared)
        scratch = [pltpu.VMEM((tb, ts), jnp.float32)]
    else:
        # ---------------- unmasked path: lane-dense flattened (B, S*S) blocks ----------------
        N = S * S
        flat_pred = predicted_distances.reshape(B, N)
        flat_targ = target_distances.reshape(B, N)

        c = _pick_tile(N, max(128, block_target // itemsize), 128)
        tb_limit = max(1, block_target // max(c * itemsize, 1))
        if B >= 16:
            tb_limit = min(tb_limit, B // 2)   # >=2 "parallel" tiles when layout rules allow
        # sublane dim of a 2-D block must be a multiple of 8 or the full batch.
        tb = _pick_tile(B, max(1, tb_limit), 8)
        if tb * c * itemsize > block_target:
            # the layout-valid tb overflowed the budget -> shrink the lane chunk instead
            c = _pick_tile(N, max(128, block_target // max(tb * itemsize, 1)), 128)
        nb, nc = B // tb, N // c

        grid = (nb, nc)
        in_specs = [
            pl.BlockSpec((tb, c), lambda bi, ci: (bi, ci)),
            pl.BlockSpec((tb, c), lambda bi, ci: (bi, ci)),
        ]
        inputs = [flat_pred, flat_targ]
        kernel = functools.partial(_unmasked_kernel, squared=squared)
        scratch = [pltpu.VMEM((tb, 1), jnp.float32)]

    sent = pl.pallas_call(
        kernel,
        out_shape=jax.ShapeDtypeStruct((nb, tb, 1), jnp.float32),
        grid=grid,
        in_specs=in_specs,
        # Output block resident across the reduction axis; written once per batch tile.
        out_specs=pl.BlockSpec((1, tb, 1), lambda bi, ri: (bi, 0, 0)),
        scratch_shapes=scratch,
        compiler_params=pltpu.CompilerParams(
            dimension_semantics=("parallel", "arbitrary"),
            vmem_limit_bytes=vmem_limit),
    )(*inputs)

    sent = sent.reshape(B)
    if normalize:
        if attention_mask is not None:
            tok = jnp.sum(attention_mask.astype(jnp.float32), axis=-1)
            valid = jnp.maximum(tok * tok, jnp.float32(1.0))
        else:
            valid = jnp.float32(S * S)
        sent = sent / valid
    return jnp.mean(sent)


def _reference_loss(pred, targ, mask=None, normalize=True, squared=False):
    pred = pred.astype(jnp.float32)
    targ = targ.astype(jnp.float32)
    if mask is not None:
        m = mask.astype(jnp.float32)
        pair = m[:, :, None] * m[:, None, :]
        pred = pred * pair
        targ = targ * pair
    else:
        pair = jnp.ones_like(pred)
    diffs = (pred - targ) ** 2 if squared else jnp.abs(pred - targ)
    sent = jnp.sum(diffs, axis=(1, 2))
    if normalize:
        valid = jnp.maximum(jnp.sum(pair, axis=(1, 2)), 1.0)
        sent = sent / valid
    return jnp.mean(sent)


if __name__ == "__main__":
    key = jax.random.PRNGKey(0)
    k1, k2, k3, k4 = jax.random.split(key, 4)

    # --- small shapes consistent with the module: batch=2, seq_len=8 ------------------------
    B, S = 2, 8
    predicted = jax.random.uniform(k1, (B, S, S), dtype=jnp.float32) * 5.0
    target = jax.random.uniform(k2, (B, S, S), dtype=jnp.float32) * 5.0
    attention_mask = jnp.array(
        [[1, 1, 1, 1, 1, 1, 1, 1],
         [1, 1, 1, 1, 1, 0, 0, 0]], dtype=jnp.float32)

    checks = []
    # masked, |diff|
    checks.append((euclidean_distance_loss(predicted, target, attention_mask),
                   _reference_loss(predicted, target, attention_mask)))
    # masked, squared
    checks.append((euclidean_distance_loss(predicted, target, attention_mask, squared=True),
                   _reference_loss(predicted, target, attention_mask, squared=True)))
    # unmasked (flattened lane-dense path)
    checks.append((euclidean_distance_loss(predicted, target, None),
                   _reference_loss(predicted, target, None)))

    # --- slightly larger case with a tiny forced block budget so the reduction grid axis
    #     (row-tile / lane-chunk) and the VMEM accumulator are actually exercised -------------
    B2, S2 = 2, 32
    pred2 = jax.random.uniform(k3, (B2, S2, S2), dtype=jnp.float32) * 3.0
    targ2 = jax.random.uniform(k4, (B2, S2, S2), dtype=jnp.float32) * 3.0
    mask2 = (jnp.arange(S2)[None, :] < jnp.array([[S2], [20]])).astype(jnp.float32)
    checks.append((euclidean_distance_loss(pred2, targ2, mask2, block_target_bytes=2048),
                   _reference_loss(pred2, targ2, mask2)))
    checks.append((euclidean_distance_loss(pred2, targ2, None, squared=True,
                                           block_target_bytes=2048),
                   _reference_loss(pred2, targ2, None, squared=True)))

    for got, want in checks:
        got = jax.block_until_ready(got)
        assert jnp.allclose(got, want, rtol=1e-5, atol=1e-5), (got, want)

    print("KERNEL_OK")
</pallas_src>

<mosaic_0001>
module attributes {stable_mosaic.version = 11 : i64} {
  func.func @_masked_kernel(%arg0: i32, %arg1: i32, %arg2: memref<1x8x8xf32, #tpu.memory_space<vmem>>, %arg3: memref<1x8x8xf32, #tpu.memory_space<vmem>>, %arg4: memref<1x1x8xf32, #tpu.memory_space<vmem>>, %arg5: memref<1x1x1x8xf32, #tpu.memory_space<vmem>>, %arg6: memref<1x1x1xf32, #tpu.memory_space<vmem>>, %arg7: memref<1x8xf32, #tpu.memory_space<vmem>>) attributes {dimension_semantics = [#tpu.dimension_semantics<parallel>, #tpu.dimension_semantics<arbitrary>], iteration_bounds = array<i64: 2, 1>, scalar_prefetch = 0 : i64, scratch_operands = 1 : i64, tpu.core_type = #tpu.core_type<tc>, window_params = [{transform_indices = @transform_0, window_bounds = array<i64: 1, 8, 8>}, {transform_indices = @transform_1, window_bounds = array<i64: 1, 8, 8>}, {transform_indices = @transform_2, window_bounds = array<i64: 1, 1, 8>}, {transform_indices = @transform_3, window_bounds = array<i64: 1, 1, 1, 8>}, {transform_indices = @transform_4, window_bounds = array<i64: 1, 1, 1>}]} {
    %c0_i32 = arith.constant 0 : i32
    %0 = arith.cmpi eq, %arg1, %c0_i32 : i32
    %1 = arith.extui %0 : i1 to i32
    %c0_i32_0 = arith.constant 0 : i32
    %2 = arith.cmpi ne, %1, %c0_i32_0 : i32
    scf.if %2 {
      %cst_19 = arith.constant 0.000000e+00 : f32
      %20 = vector.broadcast %cst_19 : f32 to vector<1x8xf32>
      %c0_20 = arith.constant 0 : index
      %c0_21 = arith.constant 0 : index
      %21 = vector.load %arg7[%c0_20, %c0_21] : memref<1x8xf32, #tpu.memory_space<vmem>>, vector<1x8xf32>
      tpu.vector_store %arg7[%c0_20, %c0_21], %20 {strides = array<i32>} : memref<1x8xf32, #tpu.memory_space<vmem>>, vector<1x8xf32>,
    } else {
    }
    %c0 = arith.constant 0 : index
    %c0_1 = arith.constant 0 : index
    %c0_2 = arith.constant 0 : index
    %3 = vector.load %arg2[%c0, %c0_1, %c0_2] : memref<1x8x8xf32, #tpu.memory_space<vmem>>, vector<1x8x8xf32>
    %c0_3 = arith.constant 0 : index
    %c0_4 = arith.constant 0 : index
    %c0_5 = arith.constant 0 : index
    %4 = vector.load %arg3[%c0_3, %c0_4, %c0_5] : memref<1x8x8xf32, #tpu.memory_space<vmem>>, vector<1x8x8xf32>
    %5 = arith.subf %3, %4 : vector<1x8x8xf32>
    %6 = math.absf %5 : vector<1x8x8xf32>
    %c0_6 = arith.constant 0 : index
    %c0_7 = arith.constant 0 : index
    %c0_8 = arith.constant 0 : index
    %7 = vector.load %arg4[%c0_6, %c0_7, %c0_8] : memref<1x1x8xf32, #tpu.memory_space<vmem>>, vector<1x1x8xf32>
    %8 = vector.broadcast %7 : vector<1x1x8xf32> to vector<1x8x8xf32>
    %9 = arith.mulf %6, %8 : vector<1x8x8xf32>
    %cst = arith.constant dense<0.000000e+00> : vector<1x8xf32>
    %10 = vector.multi_reduction <add>, %9, %cst [2] : vector<1x8x8xf32> to vector<1x8xf32>
    %c0_9 = arith.constant 0 : index
    %c0_10 = arith.constant 0 : index
    %c0_11 = arith.constant 0 : index
    %c0_12 = arith.constant 0 : index
    %11 = vector.load %arg5[%c0_9, %c0_10, %c0_11, %c0_12] : memref<1x1x1x8xf32, #tpu.memory_space<vmem>>, vector<1x1x1x8xf32>
    %12 = vector.shape_cast %11 : vector<1x1x1x8xf32> to vector<1x8xf32>
    %c0_13 = arith.constant 0 : index
    %c0_14 = arith.constant 0 : index
    %13 = vector.load %arg7[%c0_13, %c0_14] : memref<1x8xf32, #tpu.memory_space<vmem>>, vector<1x8xf32>
    %14 = arith.mulf %10, %12 : vector<1x8xf32>
    %15 = arith.addf %13, %14 : vector<1x8xf32>
    %c0_15 = arith.constant 0 : index
    %c0_16 = arith.constant 0 : index
    %16 = vector.load %arg7[%c0_15, %c0_16] : memref<1x8xf32, #tpu.memory_space<vmem>>, vector<1x8xf32>
    tpu.vector_store %arg7[%c0_15, %c0_16], %15 {strides = array<i32>} : memref<1x8xf32, #tpu.memory_space<vmem>>, vector<1x8xf32>,
    %c0_i32_17 = arith.constant 0 : i32
    %17 = arith.cmpi eq, %arg1, %c0_i32_17 : i32
    %18 = arith.extui %17 : i1 to i32
    %c0_i32_18 = arith.constant 0 : i32
    %19 = arith.cmpi ne, %18, %c0_i32_18 : i32
    scf.if %19 {
      %c0_19 = arith.constant 0 : index
      %c0_20 = arith.constant 0 : index
      %20 = vector.load %arg7[%c0_19, %c0_20] : memref<1x8xf32, #tpu.memory_space<vmem>>, vector<1x8xf32>
      %cst_21 = arith.constant dense<0.000000e+00> : vector<1xf32>
      %21 = vector.multi_reduction <add>, %20, %cst_21 [1] : vector<1x8xf32> to vector<1xf32>
      %22 = vector.shape_cast %21 : vector<1xf32> to vector<1x1xf32>
      %23 = vector.shape_cast %22 : vector<1x1xf32> to vector<1x1x1xf32>
      %c0_22 = arith.constant 0 : index
      %c0_23 = arith.constant 0 : index
      %c0_24 = arith.constant 0 : index
      %24 = vector.load %arg6[%c0_22, %c0_23, %c0_24] : memref<1x1x1xf32, #tpu.memory_space<vmem>>, vector<1x1x1xf32>
      tpu.vector_store %arg6[%c0_22, %c0_23, %c0_24], %23 {strides = array<i32>} : memref<1x1x1xf32, #tpu.memory_space<vmem>>, vector<1x1x1xf32>,
    } else {
    }
    return
  }
  func.func @transform_0(%arg0: i32, %arg1: i32) -> (i32, i32, i32) {
    %c0_i32 = arith.constant 0 : i32
    %c0_i32_0 = arith.constant 0 : i32
    return %arg0, %arg1, %c0_i32 : i32, i32, i32
  }
  func.func @transform_1(%arg0: i32, %arg1: i32) -> (i32, i32, i32) {
    %c0_i32 = arith.constant 0 : i32
    %c0_i32_0 = arith.constant 0 : i32
    return %arg0, %arg1, %c0_i32 : i32, i32, i32
  }
  func.func @transform_2(%arg0: i32, %arg1: i32) -> (i32, i32, i32) {
    %c0_i32 = arith.constant 0 : i32
    %c0_i32_0 = arith.constant 0 : i32
    %c0_i32_1 = arith.constant 0 : i32
    return %arg0, %c0_i32, %c0_i32_0 : i32, i32, i32
  }
  func.func @transform_3(%arg0: i32, %arg1: i32) -> (i32, i32, i32, i32) {
    %c0_i32 = arith.constant 0 : i32
    %c0_i32_0 = arith.constant 0 : i32
    %c0_i32_1 = arith.constant 0 : i32
    return %arg0, %arg1, %c0_i32, %c0_i32_0 : i32, i32, i32, i32
  }
  func.func @transform_4(%arg0: i32, %arg1: i32) -> (i32, i32, i32) {
    %c0_i32 = arith.constant 0 : i32
    %c0_i32_0 = arith.constant 0 : i32
    %c0_i32_1 = arith.constant 0 : i32
    return %arg0, %c0_i32, %c0_i32_0 : i32, i32, i32
  }
}

</mosaic_0001>

<bundles_post_ra>
// kernel: tpu_custom_call.1
= control target key start
LH: loop header
LB: loop body
LE: loop exit
PB: predicated region body
PF: predicated region fallthrough
CT: control target
= control target key end

     0   :  { %9 = vsyncpa [#allocation4], 0  ;;  %s998_s0 = inlined_call_operand.hbm [shape: f32[2,8,8], index: 0, kind: input, shape index: {}]   ;;  %s999_s1 = inlined_call_operand.hbm [shape: f32[2,8,8], index: 1, kind: input, shape index: {}]   ;;  %s1000_s2 = inlined_call_operand.vmem [shape: f32[2,1,8], index: 2, kind: input, shape index: {}]   ;;  %s1001_s3 = inlined_call_operand.vmem [shape: f32[2,1,1,8], index: 3, kind: input, shape index: {}]   ;;  %s1002_s4 = inlined_call_operand.vmem [shape: f32[2,1,1], index: 4, kind: output, shape index: {}]  }
   0x1   :  { %11 = vsyncpa [#allocation4 + $0x1], 0 }
   0x2   :  { %12 = vsyncpa [#allocation6], 0 }
   0x3   :  { %14 = vsyncpa [#allocation6 + $0x1], 0  ;;  %s815_s15 = smov 0   ;;  %s817_s16 = smov 0  }
   0x4   :  { %s819_s17 = smov 0   ;;  %s821_s18 = smov 0  }
   0x5   :  { %s823_s19 = smov 0   ;;  %s825_s20 = smov 0  }
   0x6 LB: > { %s587_s21 = sadd.s32 4294967295, %s783_s20   ;;  %s32_s22 = sadd.s32 1, %s779_s19  ;;  %s783_s20 = sphi %s825_s20, %s20_s20   ;;  %s779_s19 = sphi %s823_s19, %s1016_s19   ;;  %s775_s18 = sphi %s821_s18, %s1015_s18   ;;  %s771_s17 = sphi %s819_s17, %s1014_s17   ;;  %s767_s16 = sphi %s817_s16, %s1013_s16   ;;  %s763_s15 = sphi %s815_s15, %s1012_s15  }
   0x7   : > { %p34_p0 = scmp.ge.s32.totalorder %s32_s22, 2  ;;  %s41_s23 = sadd.s32 1, %s771_s17 }
   0x8   : > { %p48_p1 = scmp.ne.s32.totalorder %s771_s17, %s767_s16  ;;  %p49_p2 = scmp.eq.s32.totalorder %s783_s20, 0 }
   0x9   : > { %s1018_s22 = smov (%p34_p0, %s32_s22), 0  ;;  %p54_p4 = scmp.ne.s32.totalorder %s767_s16, %s763_s15 }
   0xa   : > { %p851_p3 = por %p49_p2, %p48_p1  ;;  %s36_s25 = ssub.s32 %s779_s19, %s1018_s22 }
   0xb   : > { %p55_p5 = scmp.eq.s32.totalorder %s587_s21, 0  ;;  %p39_p6 = scmp.eq.s32.totalorder %s36_s25, 0 }
   0xc   : > { %p615_p8 = scmp.lt.s32.totalorder %s783_s20, 2  ;;  %s867_s28 = sand.u32 1, %s771_s17  }
   0xd   : > { %p858_p7 = por %p55_p5, %p54_p4  ;;  %s592_s29 = sshll.u32 %s779_s19, 7 }
   0xe   : > { %s864_s27 = scalar_select %p39_p6, %s771_s17, %s41_s23  }
   0xf   : > { %s1005_s26 = scalar_select %p858_p7, 1, 0 }
  0x10   : > { %s591_s30 = sshll.u32 %s867_s28, 3  ;;  %s876_s7 = scalar_lea.hbm %s998_s0, %s592_s29 }
  0x11   : > { %s190_s8 = scalar_lea.vmem [#allocation3], %s591_s30  ;;  %p882_p9 = pnand %p615_p8, %p851_p3 }
  0x12   : > { %s198_s9 = sshll.u32 %s190_s8, 4  ;;  %s187_s11 = scalar_lea.sflag [#allocation4], %s867_s28  ;;  %s886_s9 = int_to_ptr.vmem [resolvable:$true] %s198_s9 }
  0x13   : > { %s669_s12 = scalar_lea.hbm %s876_s7, 128  ;;  %p671_p13 = pneg %p882_p9 }
  0x14   : > { %p670_p12 = scmp.ne.s32.totalorder %s876_s7, %s669_s12  ;;  %s674_s15 = scalar_lea.hbm %s998_s0, 256 }
  0x15   : > { %p675_p2 = scmp.lt.u32.totalorder %s876_s7, %s998_s0  ;;  %p676_p3 = scmp.lt.u32.totalorder %s674_s15, %s669_s12 }
  0x16   : > { %p672_p0 = pnand %p671_p13, %p670_p12  ;;  %p678_p5 = scmp.lt.u32.totalorder %s669_s12, %s876_s7 }
  0x17   : > { %p677_p4 = por %p676_p3, %p675_p2 }
  0x18   : > { %p673_p1 = pneg %p672_p0 }
  0x19   : > { %p679_p6 = por %p678_p5, %p677_p4 }
  0x1b   : > { %p680_p8 = pnand %p679_p6, %p673_p1 }
  0x1d   : > { %683 = shalt.err (!%p680_p8)
}
  0x1e   : > { %s684_s24 = scalar_lea.vmem %s886_s9, 128  ;;  %s785_s25 = smov [#allocation3]  }
  0x1f   : > { %p685_p12 = scmp.ne.s32.totalorder %s886_s9, %s684_s24  ;;  %s689_s5 = sshll.u32 %s785_s25, 4  ;;  %s690_s5 = int_to_ptr.vmem [resolvable:$false] %s689_s5 }
  0x20   : > { %s691_s6 = scalar_lea.vmem %s690_s5, 256  ;;  %p692_p11 = scmp.lt.s32.totalorder %s886_s9, %s690_s5 }
  0x21   : > { %p687_p0 = pnand %p685_p12, %p671_p13  ;;  %p693_p2 = scmp.lt.s32.totalorder %s691_s6, %s684_s24 }
  0x23   : > { %p688_p10 = pneg %p687_p0  ;;  %p694_p3 = por %p693_p2, %p692_p11 }
  0x25   : > { %p695_p4 = pnand %p694_p3, %p688_p10 }
  0x27   : > { %698 = shalt.err (!%p695_p4)
}
  0x28   : > { %611 = dma.hbm_to_vmem [thread:$0]  (!%p882_p9), %s876_s7, 128, %s886_s9, %s187_s11  }
  0x29   : > { %p1007_p1 = scmp.lt.s32.totalorder %s783_s20, 3  ;;  %p1008_p5 = scmp.ge.s32.totalorder %s783_s20, 1 }
  0x2a   : > { %s929_s14 = scalar_lea.hbm %s999_s1, %s592_s29  ;;  %s209_s15 = scalar_lea.vmem [#allocation5], %s591_s30 }
  0x2b   : > { %p920_p6 = pnand %p1008_p5, %p1007_p1  ;;  %s217_s21 = sshll.u32 %s209_s15, 4  ;;  %s218_s21 = int_to_ptr.vmem [resolvable:$true] %s217_s21 }
  0x2c   : > { %s206_s7 = scalar_lea.sflag [#allocation6], %s867_s28  ;;  %s699_s9 = scalar_lea.hbm %s929_s14, 128 }
  0x2d   : > { %s1009_s8 = scalar_select %p920_p6, 1, 0 }
  0x2e   : > { %p700_p10 = scmp.ne.s32.totalorder %s929_s14, %s699_s9  ;;  %s704_s29 = scalar_lea.hbm %s999_s1, 256 }
  0x2f   : > { %p705_p12 = scmp.lt.u32.totalorder %s929_s14, %s999_s1  ;;  %p706_p0 = scmp.lt.u32.totalorder %s704_s29, %s699_s9 }
  0x30   : > { %p702_p11 = pnand %p700_p10, %p671_p13  ;;  %p708_p3 = scmp.lt.u32.totalorder %s699_s9, %s929_s14 }
  0x31   : > { %p707_p2 = por %p706_p0, %p705_p12 }
  0x32   : > { %p703_p8 = pneg %p702_p11 }
  0x33   : > { %p709_p4 = por %p708_p3, %p707_p2 }
  0x35   : > { %p710_p1 = pnand %p709_p4, %p703_p8 }
  0x37   : > { %713 = shalt.err (!%p710_p1)
}
  0x38   : > { %s714_s28 = scalar_lea.vmem %s218_s21, 128  ;;  %s786_s30 = smov [#allocation5]  }
  0x39   : > { %p715_p5 = scmp.ne.s32.totalorder %s218_s21, %s714_s28  ;;  %s719_s5 = sshll.u32 %s786_s30, 4  ;;  %s720_s5 = int_to_ptr.vmem [resolvable:$false] %s719_s5 }
  0x3a   : > { %s721_s6 = scalar_lea.vmem %s720_s5, 256  ;;  %p722_p7 = scmp.lt.s32.totalorder %s218_s21, %s720_s5 }
  0x3b   : > { %p717_p10 = pnand %p715_p5, %p671_p13  ;;  %p723_p6 = scmp.lt.s32.totalorder %s721_s6, %s714_s28 }
  0x3d   : > { %p718_p11 = pneg %p717_p10  ;;  %p724_p0 = por %p723_p6, %p722_p7 }
  0x3f   : > { %p725_p12 = pnand %p724_p0, %p718_p11 }
  0x41   : > { %728 = shalt.err (!%p725_p12)
}
  0x42   : > { %614 = dma.hbm_to_vmem [thread:$0]  (!%p882_p9), %s929_s14, 128, %s218_s21, %s206_s7  }
  0x43   : > { %p1010_p8 = scmp.ne.s32.totalorder %s1009_s8, 0 }
  0x44   : > { %s243_s12 = sand.u32 (!%p1010_p8), 1, %s767_s16   ;;  %p1011_p13 = scmp.ne.s32.totalorder (!%p1010_p8), %s1005_s26, 0 }
  0x45   : > { %241 = sbr.rel (%p1010_p8) target bundleno = 541 (0x21d), region = 36  ;;  %s596_s13 = sshll.u32 (!%p1010_p8), %s243_s12, 3 }
  0x46   : > { %s244_s15 = scalar_lea.sflag (!%p1010_p8), [#allocation4], %s243_s12  ;;  %s247_s9 = scalar_lea.vmem (!%p1010_p8), [#allocation3], %s596_s13 }
  0x4c   : > { %754 = dma.done.wait (%p1011_p13), %s244_s15, 128  }
  0x4d   : > { %756 = vsyncadd (%p1011_p13), %s244_s15, 4294967168  ;;  %s253_s11 = scalar_lea.sflag [#allocation6], %s243_s12  ;;  %s256_s23 = scalar_lea.vmem [#allocation5], %s596_s13 }
  0x4e   : > { %758 = dma.done.wait (%p1011_p13), %s253_s11, 128  }
  0x4f   : > { %760 = vsyncadd (%p1011_p13), %s253_s11, 4294967168  ;;  %p293_p7 = scmp.lt.s32.totalorder %s775_s18, 1  ;;  %v311_v0 = vld [vmem:[%s247_s9] sm:$0xff]  ;;  %v312_v1 = vld [vmem:[%s256_s23] sm:$0xff]  ;;  %vm323_vm0 = vcmask 64512   ;;  %v787_v8 = vmov 0   ;;  %v344_v9 = vlaneseq }
  0x50   : > { %v313_v2 = vsub.f32 %v311_v0, %v312_v1  ;;  %667 = vset.pattern.permute.xlu1 %v787_v8  ;;  %668 = vset.pattern.permute.xlu0 %v787_v8  ;;  %v788_v13 = vmov 1966171168   ;;  %vm309_vm1 = vcmask 57344   ;;  %v789_v42 = vmov 0.0  }
  0x51   : > { %s1020_s18 = smov (!%p293_p7, %s775_s18), 1  ;;  %v345_v10 = vshrl.u32 %v344_v9, 7  ;;  %v442_v11 = vand.u32 127, %v344_v9  ;;  %v342_v14 = vunpack.c.l.s4 %v788_v13  ;;  %310 = vst.msk [vmem:[#allocation2] sm:$0x1] %vm309_vm1, %v789_v42  ;;  %vm472_vm2 = vcmask 0  }
  0x52   : > { %s295_s14 = scalar_lea.vmem %s1000_s2, %s1020_s18  ;;  %v314_v4 = vand.u32 2147483647, %v313_v2  ;;  %s301_s7 = scalar_lea.vmem %s1001_s3, %s1020_s18 }
  0x53   : > { %v598_v3 = vld [vmem:[%s295_s14] ss:$0 sm:$0xff]  ;;  %v445_v12 = vsub.s32 %v442_v11, %v345_v10  ;;  %v343_v15 = vunpack.c.0.s8 %v342_v14  ;;  %s304_s25 = scalar_lea.vmem %s1002_s4, %s1020_s18 }
  0x54   : > { %v322_v5 = vmul.f32 %v598_v3, %v314_v4  ;;  %v599_v7 = vld [vmem:[%s301_s7] ss:$0 sm:$0xff] }
  0x55   : > { %v346_v17 = vsub.s32 %v343_v15, %v345_v10 }
  0x56   : > { %v324_v6 = vsel %vm323_vm0, %v322_v5, 0.0 }
  0x57   : > { %325 = vadd.xlane.f32.xlu0 %v324_v6 }
  0x58   : > { %v328_v46 = vld [vmem:[#allocation2] sm:$0x1] }
  0x6d   : > { %335 = vbcast.lane.b32.xlu0 %v599_v7, 256 }
  0xe4   : > { %v326_v16 = vpop.xlane.xlu0 %325 }
  0xe8   : > { %v336_v18 = vpop.permute.xlu0 %335 }
  0xe9   : > { %v338_v19 = vmul.f32 %v336_v18, %v326_v16 }
  0xeb   : > { %v340_v20 = vcombine.high %v338_v19, %v338_v19  ;;  %v347_v21 = vrot.slane %v338_v19, %v346_v17 }
  0xed   : > { %v354_v22 = vrot.slane %v340_v20, %v346_v17  ;;  %v355_v23 = vcombine.high %v347_v21, %v347_v21  ;;  %v363_v25 = vrot.slane %v347_v21, %v346_v17 }
  0xef   : > { %v356_v24 = vcombine.high %v354_v22, %v354_v22  ;;  %v377_v26 = vrot.slane %v355_v23, %v346_v17  ;;  %v370_v27 = vrot.slane %v354_v22, %v346_v17 }
  0xf1   : > { %v384_v28 = vrot.slane %v356_v24, %v346_v17  ;;  %v389_v29 = vcombine.low %v363_v25, %v377_v26  ;;  %v600_v30 = vcombine.high %v363_v25, %v377_v26 }
  0xf3   : > { %v391_v31 = vcombine.low %v370_v27, %v384_v28  ;;  %v601_v32 = vcombine.high %v370_v27, %v384_v28  ;;  %v399_v33 = vrot.slane %v389_v29, %v346_v17  ;;  %v406_v34 = vrot.slane %v600_v30, %v346_v17 }
  0xf5   : > { %v413_v35 = vrot.slane %v391_v31, %v346_v17  ;;  %v420_v36 = vrot.slane %v601_v32, %v346_v17  ;;  %v421_v37 = vcombine.low %v399_v33, %v406_v34 }
  0xf7   : > { %v422_v38 = vcombine.low %v413_v35, %v420_v36  ;;  %v429_v39 = vrot.slane %v421_v37, %v346_v17 }
  0xf9   : > { %v436_v40 = vrot.slane %v422_v38, %v346_v17 }
  0xfb   : > { %v437_v41 = vcombine.low %v429_v39, %v436_v40 }
  0xfd   : > { %439 = vperm.xlu1 %667, %v437_v41  }
 0x17c   : > { %v440_v43 = vpop.permute.xlu1 %439 }
 0x17d   : > { %v446_v44 = vrot.slane %v440_v43, %v445_v12 }
 0x17f   : > { %v453_v45 = vrot.slane %v446_v44, %v346_v17 }
 0x181   : > { %v460_v47 = vrot.slane %v453_v45, %v346_v17 }
 0x183   : > { %v462_v48 = vadd.f32 %v460_v47, %v328_v46 }
 0x185   : > { %464 = vst.msk [vmem:[#allocation2] sm:$0x1] %vm309_vm1, %v462_v48 }
 0x18c   : > { %v468_v49 = vld [vmem:[#allocation2] sm:$0x1] }
 0x18d   : > { %v469_v50 = vsel %vm309_vm1, %v468_v49, 0.0 }
 0x18e   : > { %470 = vadd.xlane.f32.xlu1 %v469_v50 }
 0x21b   : > { %v471_v51 = vpop.xlane.xlu1 %470 }
 0x21c   : > { %473 = vst.msk [vmem:[%s304_s25] sm:$0x1] %vm472_vm2, %v471_v51 }
 0x21d PF: > { %s20_s20 = sadd.s32 1, %s783_s20   ;;  %s1012_s15 = smov %s767_s16 }
 0x21e   : > { %p17_p9 = scmp.ge.s32.totalorder %s20_s20, 4   ;;  %s1013_s16 = smov %s771_s17 }
 0x21f   : > { %s1014_s17 = smov %s864_s27  ;;  %s1015_s18 = smov %s779_s19 }
 0x220   : > { %s1016_s19 = smov %s1018_s22  ;;  %19 = sbr.rel (!%p17_p9) target bundleno = 6 (0x6), region = 103 }
 0x227   :  { %491 = vsyncpa [#allocation4], 1 }
 0x228   :  { %493 = vsyncpa [#allocation4 + $0x1], 1 }
 0x229   :  { %494 = vsyncpa [#allocation6], 1 }
 0x22a   :  { %496 = vsyncpa [#allocation6 + $0x1], 1 }

</bundles_post_ra>
